<compile_context>
chip_gen: v7x
topology: tpu7x:2x2x1
jax: 0.10.0
libtpu: 0.0.40
codegen_flags: <defaults>
</compile_context>

<pallas_src>
import functools

import jax
import jax.numpy as jnp
from jax.experimental import pallas as pl
from jax.experimental.pallas import tpu as pltpu


def _round_up(x, m):
    return ((x + m - 1) // m) * m


def _vmem_capacity_bytes():
    """Physical VMEM per TensorCore (conservative fallback = v7x's 64 MiB)."""
    try:
        info = pltpu.get_tpu_info()
        cap = getattr(info, "vmem_capacity_bytes", None)
        if cap:
            return int(cap)
    except Exception:
        pass
    return 64 << 20


def _dueling_q_kernel(num_layers, compute_dtype, fold_first, x_ref, *refs):
    """refs = ([w1], [w_stack], b_stack, w_q, b_q, q_out)."""
    refs = list(refs)
    q_ref = refs.pop()
    bq_ref = refs.pop()
    wq_ref = refs.pop()
    b_ref = refs.pop()
    if fold_first:
        wl_ref = refs.pop()          # fc1 (zero-padded) is row 0 of the stack
        w1_ref = None
    else:
        wl_ref = refs.pop() if num_layers > 0 else None
        w1_ref = refs.pop()
    assert not refs

    h = x_ref[...].astype(compute_dtype)
    if fold_first:
        n_stack, b_off = num_layers + 1, 0
    else:
        y = jnp.dot(h, w1_ref[...], preferred_element_type=jnp.float32)
        h = jnp.maximum(y + b_ref[0], 0.0).astype(compute_dtype)
        n_stack, b_off = num_layers, 1

    # Each layer has a distinct bias, so there is no loop-invariant broadcast
    # to hoist; the (1, dim) -> (tile, dim) sublane broadcast lives in the add.
    for i in range(n_stack):
        y = jnp.dot(h, wl_ref[i], preferred_element_type=jnp.float32)
        h = jnp.maximum(y + b_ref[i + b_off], 0.0).astype(compute_dtype)

    # Dueling combine is pre-folded into W_q / b_q (lane-padded to 128k):
    # the epilogue is a single matmul + bias and a dense, unmasked store.
    q_ref[...] = (jnp.dot(h, wq_ref[...], preferred_element_type=jnp.float32)
                  + bq_ref[...])


def fc_dueling_q_forward(x, params, *, num_layers,
                         compute_dtype=jnp.bfloat16, block_batch=512,
                         interpret=False):
    w1, b1, wl, bl, wa, ba, wv, bv = params
    n_obs, dim = w1.shape
    n_actions = wa.shape[1]
    batch = x.shape[0]
    cdt = jnp.dtype(compute_dtype)

    # ---- fold the dueling combine into the head (runs once per weight set) --
    #   Q = V + A - mean_a(A) = h @ (wa - mean_col(wa) + wv) + (ba - mean(ba) + bv)
    wa_f, wv_f = wa.astype(jnp.float32), wv.astype(jnp.float32)
    ba_f, bv_f = ba.astype(jnp.float32), bv.astype(jnp.float32)
    w_q = wa_f - jnp.mean(wa_f, axis=1, keepdims=True) + wv_f        # (dim, A)
    b_q = ba_f - jnp.mean(ba_f, axis=1, keepdims=True) + bv_f        # (1, A)

    # Lane-dense output: zero-pad head to a multiple of 128 lanes.
    a_pad = _round_up(n_actions, 128)
    w_q = jnp.pad(w_q, ((0, 0), (0, a_pad - n_actions))).astype(cdt)
    b_q = jnp.pad(b_q, ((0, 0), (0, a_pad - n_actions)))             # f32 epilogue

    b_stack = jnp.concatenate([b1[None], bl], axis=0).astype(jnp.float32)  # (L+1,1,dim)

    # Fold fc1 into the hidden stack only when the zero-padding is cheap
    # (small dim); otherwise keep fc1 separate but pad K to 128 lanes.
    fold_first = (n_obs <= dim) and (dim <= 256)
    if fold_first:
        w1p = jnp.zeros((dim, dim), w1.dtype).at[:n_obs, :].set(w1)
        w_stack = jnp.concatenate([w1p[None], wl], axis=0).astype(cdt)  # (L+1,dim,dim)
        weight_args = (w_stack, b_stack, w_q, b_q)
        k_in = dim
    else:
        k_in = _round_up(n_obs, 128)                     # lane-dense first matmul
        w1p = jnp.pad(w1, ((0, k_in - n_obs), (0, 0))).astype(cdt)
        if num_layers > 0:
            weight_args = (w1p, wl.astype(cdt), b_stack, w_q, b_q)
        else:                                            # no dummy hidden-stack DMA
            weight_args = (w1p, b_stack, w_q, b_q)

    # x: pad K; if we copy x anyway, cast it to the compute dtype in the same
    # fusion (halves input DMA bytes for bf16). Otherwise pass x untouched and
    # cast in-kernel (avoids a standalone convert pass over HBM).
    x_in = x
    if x.shape[1] != k_in:
        if x_in.dtype != cdt:
            x_in = x_in.astype(cdt)
        x_in = jnp.pad(x_in, ((0, 0), (0, k_in - x.shape[1])))

    # ---- grid / tile: ensure >=2 steps when batch allows (v7x megacore) -----
    block_batch = max(8, (int(block_batch) // 8) * 8)
    tb = min(block_batch, _round_up(pl.cdiv(batch, 2), 8))
    if tb >= batch:
        tb = batch                                       # single (full) tile
    grid = (pl.cdiv(batch, tb),)

    # ---- VMEM policy (generation aware) -------------------------------------
    cdt_bytes = cdt.itemsize
    x_bytes = jnp.dtype(x_in.dtype).itemsize
    weight_bytes = sum(int(a.size) * jnp.dtype(a.dtype).itemsize
                       for a in weight_args)
    act_bytes = 2 * tb * (k_in * x_bytes + a_pad * 4)    # pipelined x / q tiles
    scratch_bytes = tb * dim * (4 + cdt_bytes)           # f32 accumulator + h
    vmem_need = 2 * weight_bytes + act_bytes + scratch_bytes + (2 << 20)

    cp_kwargs = dict(dimension_semantics=("parallel",))  # megacore on v7x
    if vmem_need > (16 << 20):                           # v5e default scoped VMEM
        cap = _vmem_capacity_bytes()                     # clamp below physical (v7x: 64 MiB)
        cp_kwargs["vmem_limit_bytes"] = int(
            min(vmem_need, max(cap - (8 << 20), 16 << 20)))

    kernel = functools.partial(_dueling_q_kernel, num_layers, cdt, fold_first)
    out_shape = jax.ShapeDtypeStruct((batch, a_pad), jnp.float32)
    out_spec = pl.BlockSpec((tb, a_pad), lambda i: (i, 0))
    x_spec = pl.BlockSpec((tb, k_in), lambda i: (i, 0))

    def _rep_spec(shape, mode):
        idx = lambda *_: (0,) * len(shape)               # same block every step
        if mode is None:
            return pl.BlockSpec(shape, idx)
        return pl.BlockSpec(shape, idx, pipeline_mode=mode)

    def _run(single_buffer_weights):
        mode = (pl.Buffered(1)
                if (single_buffer_weights and hasattr(pl, "Buffered")) else None)
        in_specs = [x_spec] + [_rep_spec(a.shape, mode) for a in weight_args]
        return pl.pallas_call(
            kernel,
            out_shape=out_shape,
            grid=grid,
            in_specs=in_specs,
            out_specs=out_spec,
            compiler_params=pltpu.CompilerParams(**cp_kwargs),
            interpret=interpret,
        )(x_in, *weight_args)

    try:
        q_pad = _run(True)        # single-buffered resident weights
    except Exception:
        q_pad = _run(False)       # fallback: default (double) buffering
    return q_pad[:, :n_actions]


def init_params(key, dim, num_layers, n_observations, n_actions):
    """Mirror FCDuelingQ._init_weights: W ~ N(0, 0.02), b = 0 (f32 master)."""
    k1, k2, k3, k4 = jax.random.split(key, 4)
    std = 0.02
    w1 = jax.random.normal(k1, (n_observations, dim), jnp.float32) * std
    b1 = jnp.zeros((1, dim), jnp.float32)
    wl = jax.random.normal(k2, (num_layers, dim, dim), jnp.float32) * std
    bl = jnp.zeros((num_layers, 1, dim), jnp.float32)
    wa = jax.random.normal(k3, (dim, n_actions), jnp.float32) * std
    ba = jnp.zeros((1, n_actions), jnp.float32)
    wv = jax.random.normal(k4, (dim, 1), jnp.float32) * std
    bv = jnp.zeros((1, 1), jnp.float32)
    return (w1, b1, wl, bl, wa, ba, wv, bv)


def reference_forward(x, params, *, num_layers):
    """Pure-JAX f32 reference (matches the PyTorch forward)."""
    w1, b1, wl, bl, wa, ba, wv, bv = params
    h = jnp.maximum(x @ w1 + b1, 0.0)
    for i in range(num_layers):
        h = jnp.maximum(h @ wl[i] + bl[i], 0.0)
    adv = h @ wa + ba
    val = h @ wv + bv
    return val + adv - jnp.mean(adv, axis=1, keepdims=True)


if __name__ == "__main__":
    # Small shapes consistent with the module defaults.
    batch, n_obs, n_actions, dim, num_layers = 2, 4, 2, 32, 2
    key = jax.random.PRNGKey(0)
    kx, kp = jax.random.split(key)
    x = jax.random.normal(kx, (batch, n_obs), jnp.float32)
    params = init_params(kp, dim, num_layers, n_obs, n_actions)
    q_ref = reference_forward(x, params, num_layers=num_layers)

    # 1) f32 compute: exact check (folded fc1, folded dueling head, padded out).
    q = fc_dueling_q_forward(x, params, num_layers=num_layers,
                             compute_dtype=jnp.float32)
    q = jax.block_until_ready(q)
    assert q.shape == (batch, n_actions)
    assert jnp.allclose(q, q_ref, atol=1e-5, rtol=1e-5), "f32 mismatch"

    # 2) bf16 weights/activations at the MXU (v6e/v7x path), f32 epilogue.
    qb = fc_dueling_q_forward(x, params, num_layers=num_layers,
                              compute_dtype=jnp.bfloat16)
    qb = jax.block_until_ready(qb)
    assert jnp.allclose(qb, q_ref, atol=5e-4, rtol=5e-2), "bf16 mismatch"

    # 3) batched path: grid over batch with a partial last tile.
    xb = jax.random.normal(jax.random.PRNGKey(1), (300, n_obs), jnp.float32)
    qg = fc_dueling_q_forward(xb, params, num_layers=num_layers,
                              compute_dtype=jnp.float32, block_batch=128)
    qg = jax.block_until_ready(qg)
    assert jnp.allclose(qg, reference_forward(xb, params, num_layers=num_layers),
                        atol=1e-5, rtol=1e-5), "tiled mismatch"

    # 4) non-folded path (n_obs > dim, K padded to 128), incl. num_layers == 0.
    for nl in (0, 1):
        p2 = init_params(jax.random.PRNGKey(2 + nl), 32, nl, 48, n_actions)
        x2 = jax.random.normal(jax.random.PRNGKey(7 + nl), (8, 48), jnp.float32)
        q2 = jax.block_until_ready(
            fc_dueling_q_forward(x2, p2, num_layers=nl, compute_dtype=jnp.float32))
        assert jnp.allclose(q2, reference_forward(x2, p2, num_layers=nl),
                            atol=1e-5, rtol=1e-5), f"non-fold nl={nl} mismatch"

    # TODO(synk): _format()'s host-side tensor coercion and load()'s replay
    # unpacking are host utilities, not part of the forward kernel.
    print("KERNEL_OK")
</pallas_src>

<mosaic_0001>
module attributes {stable_mosaic.version = 11 : i64} {
  func.func @_dueling_q_kernel(%arg0: i32, %arg1: memref<2x32xf32, #tpu.memory_space<vmem>>, %arg2: memref<3x32x32xf32, #tpu.memory_space<vmem>>, %arg3: memref<3x1x32xf32, #tpu.memory_space<vmem>>, %arg4: memref<32x128xf32, #tpu.memory_space<vmem>>, %arg5: memref<1x128xf32, #tpu.memory_space<vmem>>, %arg6: memref<2x128xf32, #tpu.memory_space<vmem>>) attributes {dimension_semantics = [#tpu.dimension_semantics<parallel>], iteration_bounds = array<i64: 1>, scalar_prefetch = 0 : i64, scratch_operands = 0 : i64, tpu.core_type = #tpu.core_type<tc>, window_params = [{transform_indices = @transform_0, window_bounds = array<i64: 2, 32>}, {pipeline_mode = #tpu.pipeline_mode<synchronous>, transform_indices = @transform_1, window_bounds = array<i64: 3, 32, 32>}, {pipeline_mode = #tpu.pipeline_mode<synchronous>, transform_indices = @transform_2, window_bounds = array<i64: 3, 1, 32>}, {pipeline_mode = #tpu.pipeline_mode<synchronous>, transform_indices = @transform_3, window_bounds = array<i64: 32, 128>}, {pipeline_mode = #tpu.pipeline_mode<synchronous>, transform_indices = @transform_4, window_bounds = array<i64: 1, 128>}, {transform_indices = @transform_5, window_bounds = array<i64: 2, 128>}]} {
    %c0 = arith.constant 0 : index
    %c0_0 = arith.constant 0 : index
    %0 = vector.load %arg1[%c0, %c0_0] : memref<2x32xf32, #tpu.memory_space<vmem>>, vector<2x32xf32>
    %c0_1 = arith.constant 0 : index
    %c0_2 = arith.constant 0 : index
    %c0_3 = arith.constant 0 : index
    %1 = vector.load %arg2[%c0_1, %c0_2, %c0_3] : memref<3x32x32xf32, #tpu.memory_space<vmem>>, vector<1x32x32xf32>
    %2 = vector.shape_cast %1 : vector<1x32x32xf32> to vector<32x32xf32>
    %cst = arith.constant dense<0.000000e+00> : vector<2x32xf32>
    %3 = tpu.matmul %0, %2, %cst {dimension_numbers = #tpu.dot_dimension_numbers<[1], [0], [0], [1], [0, 0, 1, 1], [], []>} : vector<2x32xf32>, vector<32x32xf32>, vector<2x32xf32> -> vector<2x32xf32>
    %c0_4 = arith.constant 0 : index
    %c0_5 = arith.constant 0 : index
    %c0_6 = arith.constant 0 : index
    %4 = vector.load %arg3[%c0_4, %c0_5, %c0_6] : memref<3x1x32xf32, #tpu.memory_space<vmem>>, vector<1x1x32xf32>
    %5 = vector.shape_cast %4 : vector<1x1x32xf32> to vector<1x32xf32>
    %6 = vector.broadcast %5 : vector<1x32xf32> to vector<2x32xf32>
    %7 = arith.addf %3, %6 : vector<2x32xf32>
    %cst_7 = arith.constant 0.000000e+00 : f32
    %8 = vector.broadcast %cst_7 : f32 to vector<2x32xf32>
    %9 = arith.maximumf %7, %8 : vector<2x32xf32>
    %c1 = arith.constant 1 : index
    %c0_8 = arith.constant 0 : index
    %c0_9 = arith.constant 0 : index
    %10 = vector.load %arg2[%c1, %c0_8, %c0_9] : memref<3x32x32xf32, #tpu.memory_space<vmem>>, vector<1x32x32xf32>
    %11 = vector.shape_cast %10 : vector<1x32x32xf32> to vector<32x32xf32>
    %cst_10 = arith.constant dense<0.000000e+00> : vector<2x32xf32>
    %12 = tpu.matmul %9, %11, %cst_10 {dimension_numbers = #tpu.dot_dimension_numbers<[1], [0], [0], [1], [0, 0, 1, 1], [], []>} : vector<2x32xf32>, vector<32x32xf32>, vector<2x32xf32> -> vector<2x32xf32>
    %c1_11 = arith.constant 1 : index
    %c0_12 = arith.constant 0 : index
    %c0_13 = arith.constant 0 : index
    %13 = vector.load %arg3[%c1_11, %c0_12, %c0_13] : memref<3x1x32xf32, #tpu.memory_space<vmem>>, vector<1x1x32xf32>
    %14 = vector.shape_cast %13 : vector<1x1x32xf32> to vector<1x32xf32>
    %15 = vector.broadcast %14 : vector<1x32xf32> to vector<2x32xf32>
    %16 = arith.addf %12, %15 : vector<2x32xf32>
    %cst_14 = arith.constant 0.000000e+00 : f32
    %17 = vector.broadcast %cst_14 : f32 to vector<2x32xf32>
    %18 = arith.maximumf %16, %17 : vector<2x32xf32>
    %c2 = arith.constant 2 : index
    %c0_15 = arith.constant 0 : index
    %c0_16 = arith.constant 0 : index
    %19 = vector.load %arg2[%c2, %c0_15, %c0_16] : memref<3x32x32xf32, #tpu.memory_space<vmem>>, vector<1x32x32xf32>
    %20 = vector.shape_cast %19 : vector<1x32x32xf32> to vector<32x32xf32>
    %cst_17 = arith.constant dense<0.000000e+00> : vector<2x32xf32>
    %21 = tpu.matmul %18, %20, %cst_17 {dimension_numbers = #tpu.dot_dimension_numbers<[1], [0], [0], [1], [0, 0, 1, 1], [], []>} : vector<2x32xf32>, vector<32x32xf32>, vector<2x32xf32> -> vector<2x32xf32>
    %c2_18 = arith.constant 2 : index
    %c0_19 = arith.constant 0 : index
    %c0_20 = arith.constant 0 : index
    %22 = vector.load %arg3[%c2_18, %c0_19, %c0_20] : memref<3x1x32xf32, #tpu.memory_space<vmem>>, vector<1x1x32xf32>
    %23 = vector.shape_cast %22 : vector<1x1x32xf32> to vector<1x32xf32>
    %24 = vector.broadcast %23 : vector<1x32xf32> to vector<2x32xf32>
    %25 = arith.addf %21, %24 : vector<2x32xf32>
    %cst_21 = arith.constant 0.000000e+00 : f32
    %26 = vector.broadcast %cst_21 : f32 to vector<2x32xf32>
    %27 = arith.maximumf %25, %26 : vector<2x32xf32>
    %c0_22 = arith.constant 0 : index
    %c0_23 = arith.constant 0 : index
    %28 = vector.load %arg4[%c0_22, %c0_23] : memref<32x128xf32, #tpu.memory_space<vmem>>, vector<32x128xf32>
    %cst_24 = arith.constant dense<0.000000e+00> : vector<2x128xf32>
    %29 = tpu.matmul %27, %28, %cst_24 {dimension_numbers = #tpu.dot_dimension_numbers<[1], [0], [0], [1], [0, 0, 1, 1], [], []>} : vector<2x32xf32>, vector<32x128xf32>, vector<2x128xf32> -> vector<2x128xf32>
    %c0_25 = arith.constant 0 : index
    %c0_26 = arith.constant 0 : index
    %30 = vector.load %arg5[%c0_25, %c0_26] : memref<1x128xf32, #tpu.memory_space<vmem>>, vector<1x128xf32>
    %31 = vector.broadcast %30 : vector<1x128xf32> to vector<2x128xf32>
    %32 = arith.addf %29, %31 : vector<2x128xf32>
    %c0_27 = arith.constant 0 : index
    %c0_28 = arith.constant 0 : index
    %33 = vector.load %arg6[%c0_27, %c0_28] : memref<2x128xf32, #tpu.memory_space<vmem>>, vector<2x128xf32>
    tpu.vector_store %arg6[%c0_27, %c0_28], %32 {strides = array<i32>} : memref<2x128xf32, #tpu.memory_space<vmem>>, vector<2x128xf32>,
    return
  }
  func.func @transform_0(%arg0: i32) -> (i32, i32) {
    %c0_i32 = arith.constant 0 : i32
    %c0_i32_0 = arith.constant 0 : i32
    return %arg0, %c0_i32 : i32, i32
  }
  func.func @transform_1(%arg0: i32) -> (i32, i32, i32) {
    %c0_i32 = arith.constant 0 : i32
    %c0_i32_0 = arith.constant 0 : i32
    %c0_i32_1 = arith.constant 0 : i32
    %c0_i32_2 = arith.constant 0 : i32
    return %c0_i32, %c0_i32_0, %c0_i32_1 : i32, i32, i32
  }
  func.func @transform_2(%arg0: i32) -> (i32, i32, i32) {
    %c0_i32 = arith.constant 0 : i32
    %c0_i32_0 = arith.constant 0 : i32
    %c0_i32_1 = arith.constant 0 : i32
    %c0_i32_2 = arith.constant 0 : i32
    return %c0_i32, %c0_i32_0, %c0_i32_1 : i32, i32, i32
  }
  func.func @transform_3(%arg0: i32) -> (i32, i32) {
    %c0_i32 = arith.constant 0 : i32
    %c0_i32_0 = arith.constant 0 : i32
    %c0_i32_1 = arith.constant 0 : i32
    return %c0_i32, %c0_i32_0 : i32, i32
  }
  func.func @transform_4(%arg0: i32) -> (i32, i32) {
    %c0_i32 = arith.constant 0 : i32
    %c0_i32_0 = arith.constant 0 : i32
    %c0_i32_1 = arith.constant 0 : i32
    return %c0_i32, %c0_i32_0 : i32, i32
  }
  func.func @transform_5(%arg0: i32) -> (i32, i32) {
    %c0_i32 = arith.constant 0 : i32
    %c0_i32_0 = arith.constant 0 : i32
    return %arg0, %c0_i32 : i32, i32
  }
}

module attributes {stable_mosaic.version = 11 : i64} {
  func.func @_dueling_q_kernel(%arg0: i32, %arg1: memref<2x32xf32, #tpu.memory_space<vmem>>, %arg2: memref<3x32x32xf32, #tpu.memory_space<vmem>>, %arg3: memref<3x1x32xf32, #tpu.memory_space<vmem>>, %arg4: memref<32x128xf32, #tpu.memory_space<vmem>>, %arg5: memref<1x128xf32, #tpu.memory_space<vmem>>, %arg6: memref<2x128xf32, #tpu.memory_space<vmem>>) attributes {dimension_semantics = [#tpu.dimension_semantics<parallel>], iteration_bounds = array<i64: 1>, scalar_prefetch = 0 : i64, scratch_operands = 0 : i64, tpu.core_type = #tpu.core_type<tc>, window_params = [{transform_indices = @transform_0, window_bounds = array<i64: 2, 32>}, {pipeline_mode = #tpu.pipeline_mode<synchronous>, transform_indices = @transform_1, window_bounds = array<i64: 3, 32, 32>}, {pipeline_mode = #tpu.pipeline_mode<synchronous>, transform_indices = @transform_2, window_bounds = array<i64: 3, 1, 32>}, {pipeline_mode = #tpu.pipeline_mode<synchronous>, transform_indices = @transform_3, window_bounds = array<i64: 32, 128>}, {pipeline_mode = #tpu.pipeline_mode<synchronous>, transform_indices = @transform_4, window_bounds = array<i64: 1, 128>}, {transform_indices = @transform_5, window_bounds = array<i64: 2, 128>}]} {
    %c0 = arith.constant 0 : index
    %c0_0 = arith.constant 0 : index
    %0 = vector.load %arg1[%c0, %c0_0] : memref<2x32xf32, #tpu.memory_space<vmem>>, vector<2x32xf32>
    %c0_1 = arith.constant 0 : index
    %c0_2 = arith.constant 0 : index
    %c0_3 = arith.constant 0 : index
    %1 = vector.load %arg2[%c0_1, %c0_2, %c0_3] : memref<3x32x32xf32, #tpu.memory_space<vmem>>, vector<1x32x32xf32>
    %2 = vector.shape_cast %1 : vector<1x32x32xf32> to vector<32x32xf32>
    %cst = arith.constant dense<0.000000e+00> : vector<2x32xf32>
    %3 = tpu.matmul %0, %2, %cst {dimension_numbers = #tpu.dot_dimension_numbers<[1], [0], [0], [1], [0, 0, 1, 1], [], []>} : vector<2x32xf32>, vector<32x32xf32>, vector<2x32xf32> -> vector<2x32xf32>
    %c0_4 = arith.constant 0 : index
    %c0_5 = arith.constant 0 : index
    %c0_6 = arith.constant 0 : index
    %4 = vector.load %arg3[%c0_4, %c0_5, %c0_6] : memref<3x1x32xf32, #tpu.memory_space<vmem>>, vector<1x1x32xf32>
    %5 = vector.shape_cast %4 : vector<1x1x32xf32> to vector<1x32xf32>
    %6 = vector.broadcast %5 : vector<1x32xf32> to vector<2x32xf32>
    %7 = arith.addf %3, %6 : vector<2x32xf32>
    %cst_7 = arith.constant 0.000000e+00 : f32
    %8 = vector.broadcast %cst_7 : f32 to vector<2x32xf32>
    %9 = arith.maximumf %7, %8 : vector<2x32xf32>
    %c1 = arith.constant 1 : index
    %c0_8 = arith.constant 0 : index
    %c0_9 = arith.constant 0 : index
    %10 = vector.load %arg2[%c1, %c0_8, %c0_9] : memref<3x32x32xf32, #tpu.memory_space<vmem>>, vector<1x32x32xf32>
    %11 = vector.shape_cast %10 : vector<1x32x32xf32> to vector<32x32xf32>
    %cst_10 = arith.constant dense<0.000000e+00> : vector<2x32xf32>
    %12 = tpu.matmul %9, %11, %cst_10 {dimension_numbers = #tpu.dot_dimension_numbers<[1], [0], [0], [1], [0, 0, 1, 1], [], []>} : vector<2x32xf32>, vector<32x32xf32>, vector<2x32xf32> -> vector<2x32xf32>
    %c1_11 = arith.constant 1 : index
    %c0_12 = arith.constant 0 : index
    %c0_13 = arith.constant 0 : index
    %13 = vector.load %arg3[%c1_11, %c0_12, %c0_13] : memref<3x1x32xf32, #tpu.memory_space<vmem>>, vector<1x1x32xf32>
    %14 = vector.shape_cast %13 : vector<1x1x32xf32> to vector<1x32xf32>
    %15 = vector.broadcast %14 : vector<1x32xf32> to vector<2x32xf32>
    %16 = arith.addf %12, %15 : vector<2x32xf32>
    %cst_14 = arith.constant 0.000000e+00 : f32
    %17 = vector.broadcast %cst_14 : f32 to vector<2x32xf32>
    %18 = arith.maximumf %16, %17 : vector<2x32xf32>
    %c2 = arith.constant 2 : index
    %c0_15 = arith.constant 0 : index
    %c0_16 = arith.constant 0 : index
    %19 = vector.load %arg2[%c2, %c0_15, %c0_16] : memref<3x32x32xf32, #tpu.memory_space<vmem>>, vector<1x32x32xf32>
    %20 = vector.shape_cast %19 : vector<1x32x32xf32> to vector<32x32xf32>
    %cst_17 = arith.constant dense<0.000000e+00> : vector<2x32xf32>
    %21 = tpu.matmul %18, %20, %cst_17 {dimension_numbers = #tpu.dot_dimension_numbers<[1], [0], [0], [1], [0, 0, 1, 1], [], []>} : vector<2x32xf32>, vector<32x32xf32>, vector<2x32xf32> -> vector<2x32xf32>
    %c2_18 = arith.constant 2 : index
    %c0_19 = arith.constant 0 : index
    %c0_20 = arith.constant 0 : index
    %22 = vector.load %arg3[%c2_18, %c0_19, %c0_20] : memref<3x1x32xf32, #tpu.memory_space<vmem>>, vector<1x1x32xf32>
    %23 = vector.shape_cast %22 : vector<1x1x32xf32> to vector<1x32xf32>
    %24 = vector.broadcast %23 : vector<1x32xf32> to vector<2x32xf32>
    %25 = arith.addf %21, %24 : vector<2x32xf32>
    %cst_21 = arith.constant 0.000000e+00 : f32
    %26 = vector.broadcast %cst_21 : f32 to vector<2x32xf32>
    %27 = arith.maximumf %25, %26 : vector<2x32xf32>
    %c0_22 = arith.constant 0 : index
    %c0_23 = arith.constant 0 : index
    %28 = vector.load %arg4[%c0_22, %c0_23] : memref<32x128xf32, #tpu.memory_space<vmem>>, vector<32x128xf32>
    %cst_24 = arith.constant dense<0.000000e+00> : vector<2x128xf32>
    %29 = tpu.matmul %27, %28, %cst_24 {dimension_numbers = #tpu.dot_dimension_numbers<[1], [0], [0], [1], [0, 0, 1, 1], [], []>} : vector<2x32xf32>, vector<32x128xf32>, vector<2x128xf32> -> vector<2x128xf32>
    %c0_25 = arith.constant 0 : index
    %c0_26 = arith.constant 0 : index
    %30 = vector.load %arg5[%c0_25, %c0_26] : memref<1x128xf32, #tpu.memory_space<vmem>>, vector<1x128xf32>
    %31 = vector.broadcast %30 : vector<1x128xf32> to vector<2x128xf32>
    %32 = arith.addf %29, %31 : vector<2x128xf32>
    %c0_27 = arith.constant 0 : index
    %c0_28 = arith.constant 0 : index
    %33 = vector.load %arg6[%c0_27, %c0_28] : memref<2x128xf32, #tpu.memory_space<vmem>>, vector<2x128xf32>
    tpu.vector_store %arg6[%c0_27, %c0_28], %32 {strides = array<i32>} : memref<2x128xf32, #tpu.memory_space<vmem>>, vector<2x128xf32>,
    return
  }
  func.func @transform_0(%arg0: i32) -> (i32, i32) {
    %c0_i32 = arith.constant 0 : i32
    %c0_i32_0 = arith.constant 0 : i32
    return %arg0, %c0_i32 : i32, i32
  }
  func.func @transform_1(%arg0: i32) -> (i32, i32, i32) {
    %c0_i32 = arith.constant 0 : i32
    %c0_i32_0 = arith.constant 0 : i32
    %c0_i32_1 = arith.constant 0 : i32
    %c0_i32_2 = arith.constant 0 : i32
    return %c0_i32, %c0_i32_0, %c0_i32_1 : i32, i32, i32
  }
  func.func @transform_2(%arg0: i32) -> (i32, i32, i32) {
    %c0_i32 = arith.constant 0 : i32
    %c0_i32_0 = arith.constant 0 : i32
    %c0_i32_1 = arith.constant 0 : i32
    %c0_i32_2 = arith.constant 0 : i32
    return %c0_i32, %c0_i32_0, %c0_i32_1 : i32, i32, i32
  }
  func.func @transform_3(%arg0: i32) -> (i32, i32) {
    %c0_i32 = arith.constant 0 : i32
    %c0_i32_0 = arith.constant 0 : i32
    %c0_i32_1 = arith.constant 0 : i32
    return %c0_i32, %c0_i32_0 : i32, i32
  }
  func.func @transform_4(%arg0: i32) -> (i32, i32) {
    %c0_i32 = arith.constant 0 : i32
    %c0_i32_0 = arith.constant 0 : i32
    %c0_i32_1 = arith.constant 0 : i32
    return %c0_i32, %c0_i32_0 : i32, i32
  }
  func.func @transform_5(%arg0: i32) -> (i32, i32) {
    %c0_i32 = arith.constant 0 : i32
    %c0_i32_0 = arith.constant 0 : i32
    return %arg0, %c0_i32 : i32, i32
  }
}

</mosaic_0001>

<bundles_post_ra>
// kernel: tpu_custom_call.1
= control target key start
LH: loop header
LB: loop body
LE: loop exit
PB: predicated region body
PF: predicated region fallthrough
CT: control target
= control target key end

     0   :  { %10 = vsyncpa [#allocation3], 0  ;;  %s736_s0 = inlined_call_operand.hbm [shape: f32[2,32], index: 0, kind: input, shape index: {}]   ;;  %s737_s1 = inlined_call_operand.hbm [shape: f32[3,32,32], index: 1, kind: input, shape index: {}]   ;;  %s738_s2 = inlined_call_operand.vmem [shape: f32[3,1,32], index: 2, kind: input, shape index: {}]   ;;  %s739_s3 = inlined_call_operand.hbm [shape: f32[32,128], index: 3, kind: input, shape index: {}]   ;;  %s740_s4 = inlined_call_operand.vmem [shape: f32[1,128], index: 4, kind: input, shape index: {}]   ;;  %s741_s5 = inlined_call_operand.hbm [shape: f32[2,128], index: 5, kind: output, shape index: {}]  }
   0x1   :  { %11 = vsyncpa [#allocation6], 0 }
   0x2   :  { %12 = vsyncpa [#allocation4], 0  ;;  %s623_s18 = smov [#allocation5]   ;;  %s529_s22 = scalar_lea.hbm %s737_s1, 1536 }
   0x3   :  { %s28_s19 = sshll.u32 %s623_s18, 4  ;;  %p530_p0 = scmp.ne.s32.totalorder %s737_s1, %s529_s22  ;;  %s29_s19 = int_to_ptr.vmem [resolvable:$true] %s28_s19 }
   0x4   :  { %p533_p1 = scmp.lt.u32.totalorder %s529_s22, %s737_s1 }
   0x6   :  { %p535_p2 = pnand %p533_p1, %p530_p0 }
   0x8   :  { %538 = shalt.err (!%p535_p2)
}
   0x9   :  { %s539_s27 = scalar_lea.vmem %s29_s19, 1536  ;;  %p544_p4 = scmp.lt.s32.totalorder %s29_s19, %s29_s19 }
   0xa   :  { %p540_p3 = scmp.ne.s32.totalorder %s29_s19, %s539_s27  ;;  %p545_p5 = scmp.lt.s32.totalorder %s539_s27, %s539_s27 }
   0xc   :  { %p546_p6 = por %p545_p5, %p544_p4 }
   0xe   :  { %p547_p7 = pnand %p546_p6, %p540_p3 }
  0x10   :  { %550 = shalt.err (!%p547_p7)
}
  0x11   :  { %s624_s28 = smov 128   ;;  %s625_s29 = smov 8  }
  0x12   :  { %34 = dma.hbm_to_vmem [thread:$0]  %s737_s1, 1536, %s29_s19, [#allocation6], %s624_s28, %s624_s28, %s625_s29  }
  0x13   :  { %s626_s7 = smov [#allocation2]   ;;  %s627_s9 = smov [#allocation7]  }
  0x14   :  { %s19_s8 = sshll.u32 %s626_s7, 4  ;;  %s42_s10 = sshll.u32 %s627_s9, 4  ;;  %s20_s8 = int_to_ptr.vmem [resolvable:$true] %s19_s8  ;;  %s43_s10 = int_to_ptr.vmem [resolvable:$true] %s42_s10 }
  0x15   :  { %s551_s13 = scalar_lea.hbm %s736_s0, 32 }
  0x16   :  { %p552_p8 = scmp.ne.s32.totalorder %s736_s0, %s551_s13  ;;  %p555_p9 = scmp.lt.u32.totalorder %s551_s13, %s736_s0 }
  0x18   :  { %p557_p10 = pnand %p555_p9, %p552_p8 }
  0x1a   :  { %560 = shalt.err (!%p557_p10)
}
  0x1b   :  { %s561_s1 = scalar_lea.vmem %s20_s8, 32  ;;  %p566_p12 = scmp.lt.s32.totalorder %s20_s8, %s20_s8 }
  0x1c   :  { %p562_p11 = scmp.ne.s32.totalorder %s20_s8, %s561_s1  ;;  %p567_p13 = scmp.lt.s32.totalorder %s561_s1, %s561_s1 }
  0x1e   :  { %p568_p0 = por %p567_p13, %p566_p12 }
  0x20   :  { %p569_p1 = pnand %p568_p0, %p562_p11 }
  0x22   :  { %572 = shalt.err (!%p569_p1)
}
  0x23   :  { %22 = dma.hbm_to_vmem [thread:$0]  %s736_s0, 32, %s20_s8, [#allocation3]  }
  0x24   :  { %s573_s22 = scalar_lea.hbm %s739_s3, 512 }
  0x25   :  { %p574_p2 = scmp.ne.s32.totalorder %s739_s3, %s573_s22  ;;  %p577_p3 = scmp.lt.u32.totalorder %s573_s22, %s739_s3 }
  0x27   :  { %p579_p4 = pnand %p577_p3, %p574_p2 }
  0x29   :  { %582 = shalt.err (!%p579_p4)
}
  0x2a   :  { %s583_s27 = scalar_lea.vmem %s43_s10, 512  ;;  %p588_p6 = scmp.lt.s32.totalorder %s43_s10, %s43_s10 }
  0x2b   :  { %p584_p5 = scmp.ne.s32.totalorder %s43_s10, %s583_s27  ;;  %p589_p7 = scmp.lt.s32.totalorder %s583_s27, %s583_s27 }
  0x2d   :  { %p590_p8 = por %p589_p7, %p588_p6 }
  0x2f   :  { %p591_p9 = pnand %p590_p8, %p584_p5 }
  0x31   :  { %594 = shalt.err (!%p591_p9)
}
  0x32   :  { %48 = dma.hbm_to_vmem [thread:$0]  %s739_s3, 512, %s43_s10, [#allocation6], %s624_s28, %s624_s28, %s625_s29  }
  0x33   :  { %617 = dma.done.wait [#allocation3], 32  }
  0x34   :  { %618 = vsyncadd [#allocation3], 4294967264 }
  0x35   :  { %619 = dma.done.wait [#allocation6], 2048  }
  0x36   :  { %620 = vsyncadd [#allocation6], 4294965248  ;;  %v628_v0 = vmov 0.0|0.0   ;;  %vm629_vm0 = vmmov 0   ;;  %v630_v1 = vmov 0.0   ;;  %v61_v2 = vld [vmem:[#allocation5] sm:$0xff] }
  0x37   :  { %496 = vmatprep.subr.bf16.mxu0 %v628_v0  ;;  %460 = vmatprep.mubr.msk.f32.mxu0 %vm629_vm0, %v630_v1  ;;  %v62_v3 = vld [vmem:[#allocation5 + $0x8] sm:$0xff]  ;;  %v63_v4 = vld [vmem:[#allocation5 + $0x10] sm:$0xff]  ;;  %v64_v6 = vld [vmem:[#allocation5 + $0x18] sm:$0xff]  ;;  %vm72_vm1 = vcmask 261120   ;;  %s631_s11 = smov [#allocation8]  }
  0x38   :  { %502 = vmatprep.subr.bf16.mxu1 %v628_v0  ;;  %471 = vmatprep.mubr.msk.f32.mxu1 %vm629_vm0, %v630_v1  ;;  %v497_v5 = vpack.c.bf16 %v62_v3, %v61_v2  ;;  %v148_v7 = vld [vmem:[#allocation5 + $0x20] sm:$0xff]  ;;  %v149_v8 = vld [vmem:[#allocation5 + $0x28] sm:$0xff]  ;;  %v500_v9 = vpack.c.bf16 %v64_v6, %v63_v4  ;;  %v60_v11 = vld [vmem:[#allocation2] sm:$0x3]  ;;  %s412_s12 = sshll.u32 %s631_s11, 4  ;;  %s413_s12 = int_to_ptr.vmem [resolvable:$true] %s412_s12 }
  0x39   :  { %v503_v10 = vpack.c.bf16 %v149_v8, %v148_v7  ;;  %v150_v12 = vld [vmem:[#allocation5 + $0x30] sm:$0xff]  ;;  %v151_v13 = vld [vmem:[#allocation5 + $0x38] sm:$0xff]  ;;  %v235_v15 = vld [vmem:[#allocation5 + $0x40] sm:$0xff]  ;;  %s595_s13 = scalar_lea.vmem %s413_s12, 32  ;;  %p600_p11 = scmp.lt.s32.totalorder %s413_s12, %s413_s12 }
  0x3a   :  { %498 = vmatpush3.bf16.msra.mxu0 %v497_v5  ;;  %v506_v14 = vpack.c.bf16 %v151_v13, %v150_v12  ;;  %v236_v16 = vld [vmem:[#allocation5 + $0x48] sm:$0xff]  ;;  %v422_v18 = vld [vmem:[%s738_s2] ss:$0 sm:$0xff]  ;;  %v238_v24 = vld [vmem:[#allocation5 + $0x58] sm:$0xff]  ;;  %p596_p10 = scmp.ne.s32.totalorder %s413_s12, %s595_s13  ;;  %p601_p12 = scmp.lt.s32.totalorder %s595_s13, %s595_s13 }
  0x3b   :  { %499 = vmatprep.subr.bf16.mxu0 %v628_v0  ;;  %504 = vmatpush3.bf16.msra.mxu1 %v503_v10  ;;  %v509_v17 = vpack.c.bf16 %v236_v16, %v235_v15  ;;  %v237_v23 = vld [vmem:[#allocation5 + $0x50] sm:$0xff]  ;;  %v321_v26 = vld [vmem:[#allocation7] sm:$0xff]  ;;  %v322_v27 = vld [vmem:[#allocation7 + $0x8] sm:$0xff] }
  0x3c   :  { %505 = vmatprep.subr.bf16.mxu1 %v628_v0  ;;  %v512_v25 = vpack.c.bf16 %v238_v24, %v237_v23  ;;  %v515_v28 = vpack.c.bf16 %v322_v27, %v321_v26  ;;  %v425_v29 = vld [vmem:[%s738_s2 + $0x1] ss:$0 sm:$0xff]  ;;  %v324_v35 = vld [vmem:[#allocation7 + $0x18] sm:$0xff]  ;;  %v430_v42 = vld [vmem:[%s740_s4] ss:$0 sm:$0xff]  ;;  %p602_p13 = por %p601_p12, %p600_p11 }
  0x3d   :  { %v323_v34 = vld [vmem:[#allocation7 + $0x10] sm:$0xff]  ;;  %v428_v37 = vld [vmem:[%s738_s2 + $0x2] ss:$0 sm:$0xff] }
  0x3e   :  { %501 = vmatpush3.bf16.msra.mxu0 %v500_v9  ;;  %v518_v36 = vpack.c.bf16 %v324_v35, %v323_v34  ;;  %p603_p0 = pnand %p602_p13, %p596_p10 }
  0x3f   :  { %508 = vmatprep.subr.bf16.mxu0 %v628_v0  ;;  %507 = vmatpush3.bf16.msra.mxu1 %v506_v14 }
  0x40   :  { %514 = vmatprep.subr.bf16.mxu1 %v628_v0 }
  0x41   :  { %461 = vmatmul.mubr.msk.f32.vlgmr.msra.gmra.mrb[0].mxu0 %vm72_vm1, %v60_v11 }
  0x42   :  { %482 = vmatprep.mubr.msk.f32.mxu0 %vm629_vm0, %v630_v1  ;;  %510 = vmatpush3.bf16.msra.mxu0 %v509_v17 }
  0x43   :  { %511 = vmatprep.subr.bf16.mxu0 %v628_v0 }
  0x46   :  { %513 = vmatpush3.bf16.msra.mxu0 %v512_v25 }
 0x114   :  { %v142_v19 = vpop.f32.mrb[0].mxu0 }
 0x115   :  { %v143_v20 = vadd.f32 %v422_v18, %v142_v19  ;;  %v462_v21 = vpop.f32.mrb[1].mxu0 }
 0x117   :  { %v146_v22 = vmax.f32 %v143_v20, 0.0 }
 0x119   :  { %472 = vmatmul.mubr.msk.f32.vlgmr.msra.gmra.mrb[0].mxu1 %vm72_vm1, %v146_v22 }
 0x11a   :  { %493 = vmatprep.mubr.msk.f32.mxu1 %vm629_vm0, %v630_v1  ;;  %516 = vmatpush3.bf16.msra.mxu1 %v515_v28 }
 0x11b   :  { %517 = vmatprep.subr.bf16.mxu1 %v628_v0 }
 0x11e   :  { %519 = vmatpush3.bf16.msra.mxu1 %v518_v36 }
 0x1ec   :  { %v229_v30 = vpop.f32.mrb[0].mxu1 }
 0x1ed   :  { %v230_v31 = vadd.f32 %v425_v29, %v229_v30  ;;  %v473_v32 = vpop.f32.mrb[1].mxu1 }
 0x1ef   :  { %v233_v33 = vmax.f32 %v230_v31, 0.0 }
 0x1f1   :  { %483 = vmatmul.mubr.msk.f32.vlgmr.msra.gmra.mrb[2].mxu0 %vm72_vm1, %v233_v33 }
 0x2c4   :  { %v316_v38 = vpop.f32.mrb[2].mxu0 }
 0x2c5   :  { %v317_v39 = vadd.f32 %v428_v37, %v316_v38  ;;  %v484_v40 = vpop.f32.mrb[3].mxu0 }
 0x2c7   :  { %v320_v41 = vmax.f32 %v317_v39, 0.0 }
 0x2c9   :  { %494 = vmatmul.mubr.msk.f32.vlgmr.msra.gmra.mrb[2].mxu1 %vm72_vm1, %v320_v41 }
 0x39c   :  { %v401_v43 = vpop.f32.mrb[2].mxu1 }
 0x39d   :  { %v402_v44 = vadd.f32 %v430_v42, %v401_v43  ;;  %v495_v45 = vpop.f32.mrb[3].mxu1 }
 0x39f   :  { %405 = vst [vmem:[#allocation8] sm:$0x3] %v402_v44 }
 0x3a0   :  { %606 = shalt.err (!%p603_p0)
}
 0x3a1   :  { %s607_s15 = scalar_lea.hbm %s741_s5, 32 }
 0x3a2   :  { %p608_p1 = scmp.ne.s32.totalorder %s741_s5, %s607_s15  ;;  %p611_p2 = scmp.lt.u32.totalorder %s607_s15, %s741_s5 }
 0x3a4   :  { %p613_p3 = pnand %p611_p2, %p608_p1 }
 0x3a6   :  { %616 = shalt.err (!%p613_p3)
}
 0x3a7   :  { %415 = dma.vmem_to_hbm [thread:$0]  %s413_s12, 32, %s741_s5, [#allocation4]  }
 0x3a8   :  { %621 = dma.done.wait [#allocation4], 32  }
 0x3a9   :  { %622 = vsyncadd [#allocation4], 4294967264 }
 0x3aa   :  { %419 = vsyncpa [#allocation3], 1 }
 0x3ab   :  { %420 = vsyncpa [#allocation6], 1 }
 0x3ac   :  { %421 = vsyncpa [#allocation4], 1 }

// kernel: tpu_custom_call.1
= control target key start
LH: loop header
LB: loop body
LE: loop exit
PB: predicated region body
PF: predicated region fallthrough
CT: control target
= control target key end

     0   :  { %10 = vsyncpa [#allocation3], 0  ;;  %s736_s0 = inlined_call_operand.hbm [shape: f32[2,32], index: 0, kind: input, shape index: {}]   ;;  %s737_s1 = inlined_call_operand.hbm [shape: f32[3,32,32], index: 1, kind: input, shape index: {}]   ;;  %s738_s2 = inlined_call_operand.vmem [shape: f32[3,1,32], index: 2, kind: input, shape index: {}]   ;;  %s739_s3 = inlined_call_operand.hbm [shape: f32[32,128], index: 3, kind: input, shape index: {}]   ;;  %s740_s4 = inlined_call_operand.vmem [shape: f32[1,128], index: 4, kind: input, shape index: {}]   ;;  %s741_s5 = inlined_call_operand.hbm [shape: f32[2,128], index: 5, kind: output, shape index: {}]  }
   0x1   :  { %11 = vsyncpa [#allocation6], 0 }
   0x2   :  { %12 = vsyncpa [#allocation4], 0  ;;  %s623_s18 = smov [#allocation5]   ;;  %s529_s22 = scalar_lea.hbm %s737_s1, 1536 }
   0x3   :  { %s28_s19 = sshll.u32 %s623_s18, 4  ;;  %p530_p0 = scmp.ne.s32.totalorder %s737_s1, %s529_s22  ;;  %s29_s19 = int_to_ptr.vmem [resolvable:$true] %s28_s19 }
   0x4   :  { %p533_p1 = scmp.lt.u32.totalorder %s529_s22, %s737_s1 }
   0x6   :  { %p535_p2 = pnand %p533_p1, %p530_p0 }
   0x8   :  { %538 = shalt.err (!%p535_p2)
}
   0x9   :  { %s539_s27 = scalar_lea.vmem %s29_s19, 1536  ;;  %p544_p4 = scmp.lt.s32.totalorder %s29_s19, %s29_s19 }
   0xa   :  { %p540_p3 = scmp.ne.s32.totalorder %s29_s19, %s539_s27  ;;  %p545_p5 = scmp.lt.s32.totalorder %s539_s27, %s539_s27 }
   0xc   :  { %p546_p6 = por %p545_p5, %p544_p4 }
   0xe   :  { %p547_p7 = pnand %p546_p6, %p540_p3 }
  0x10   :  { %550 = shalt.err (!%p547_p7)
}
  0x11   :  { %s624_s28 = smov 128   ;;  %s625_s29 = smov 8  }
  0x12   :  { %34 = dma.hbm_to_vmem [thread:$0]  %s737_s1, 1536, %s29_s19, [#allocation6], %s624_s28, %s624_s28, %s625_s29  }
  0x13   :  { %s626_s7 = smov [#allocation2]   ;;  %s627_s9 = smov [#allocation7]  }
  0x14   :  { %s19_s8 = sshll.u32 %s626_s7, 4  ;;  %s42_s10 = sshll.u32 %s627_s9, 4  ;;  %s20_s8 = int_to_ptr.vmem [resolvable:$true] %s19_s8  ;;  %s43_s10 = int_to_ptr.vmem [resolvable:$true] %s42_s10 }
  0x15   :  { %s551_s13 = scalar_lea.hbm %s736_s0, 32 }
  0x16   :  { %p552_p8 = scmp.ne.s32.totalorder %s736_s0, %s551_s13  ;;  %p555_p9 = scmp.lt.u32.totalorder %s551_s13, %s736_s0 }
  0x18   :  { %p557_p10 = pnand %p555_p9, %p552_p8 }
  0x1a   :  { %560 = shalt.err (!%p557_p10)
}
  0x1b   :  { %s561_s1 = scalar_lea.vmem %s20_s8, 32  ;;  %p566_p12 = scmp.lt.s32.totalorder %s20_s8, %s20_s8 }
  0x1c   :  { %p562_p11 = scmp.ne.s32.totalorder %s20_s8, %s561_s1  ;;  %p567_p13 = scmp.lt.s32.totalorder %s561_s1, %s561_s1 }
  0x1e   :  { %p568_p0 = por %p567_p13, %p566_p12 }
  0x20   :  { %p569_p1 = pnand %p568_p0, %p562_p11 }
  0x22   :  { %572 = shalt.err (!%p569_p1)
}
  0x23   :  { %22 = dma.hbm_to_vmem [thread:$0]  %s736_s0, 32, %s20_s8, [#allocation3]  }
  0x24   :  { %s573_s22 = scalar_lea.hbm %s739_s3, 512 }
  0x25   :  { %p574_p2 = scmp.ne.s32.totalorder %s739_s3, %s573_s22  ;;  %p577_p3 = scmp.lt.u32.totalorder %s573_s22, %s739_s3 }
  0x27   :  { %p579_p4 = pnand %p577_p3, %p574_p2 }
  0x29   :  { %582 = shalt.err (!%p579_p4)
}
  0x2a   :  { %s583_s27 = scalar_lea.vmem %s43_s10, 512  ;;  %p588_p6 = scmp.lt.s32.totalorder %s43_s10, %s43_s10 }
  0x2b   :  { %p584_p5 = scmp.ne.s32.totalorder %s43_s10, %s583_s27  ;;  %p589_p7 = scmp.lt.s32.totalorder %s583_s27, %s583_s27 }
  0x2d   :  { %p590_p8 = por %p589_p7, %p588_p6 }
  0x2f   :  { %p591_p9 = pnand %p590_p8, %p584_p5 }
  0x31   :  { %594 = shalt.err (!%p591_p9)
}
  0x32   :  { %48 = dma.hbm_to_vmem [thread:$0]  %s739_s3, 512, %s43_s10, [#allocation6], %s624_s28, %s624_s28, %s625_s29  }
  0x33   :  { %617 = dma.done.wait [#allocation3], 32  }
  0x34   :  { %618 = vsyncadd [#allocation3], 4294967264 }
  0x35   :  { %619 = dma.done.wait [#allocation6], 2048  }
  0x36   :  { %620 = vsyncadd [#allocation6], 4294965248  ;;  %v628_v0 = vmov 0.0|0.0   ;;  %vm629_vm0 = vmmov 0   ;;  %v630_v1 = vmov 0.0   ;;  %v61_v2 = vld [vmem:[#allocation5] sm:$0xff] }
  0x37   :  { %496 = vmatprep.subr.bf16.mxu0 %v628_v0  ;;  %460 = vmatprep.mubr.msk.f32.mxu0 %vm629_vm0, %v630_v1  ;;  %v62_v3 = vld [vmem:[#allocation5 + $0x8] sm:$0xff]  ;;  %v63_v4 = vld [vmem:[#allocation5 + $0x10] sm:$0xff]  ;;  %v64_v6 = vld [vmem:[#allocation5 + $0x18] sm:$0xff]  ;;  %vm72_vm1 = vcmask 261120   ;;  %s631_s11 = smov [#allocation8]  }
  0x38   :  { %502 = vmatprep.subr.bf16.mxu1 %v628_v0  ;;  %471 = vmatprep.mubr.msk.f32.mxu1 %vm629_vm0, %v630_v1  ;;  %v497_v5 = vpack.c.bf16 %v62_v3, %v61_v2  ;;  %v148_v7 = vld [vmem:[#allocation5 + $0x20] sm:$0xff]  ;;  %v149_v8 = vld [vmem:[#allocation5 + $0x28] sm:$0xff]  ;;  %v500_v9 = vpack.c.bf16 %v64_v6, %v63_v4  ;;  %v60_v11 = vld [vmem:[#allocation2] sm:$0x3]  ;;  %s412_s12 = sshll.u32 %s631_s11, 4  ;;  %s413_s12 = int_to_ptr.vmem [resolvable:$true] %s412_s12 }
  0x39   :  { %v503_v10 = vpack.c.bf16 %v149_v8, %v148_v7  ;;  %v150_v12 = vld [vmem:[#allocation5 + $0x30] sm:$0xff]  ;;  %v151_v13 = vld [vmem:[#allocation5 + $0x38] sm:$0xff]  ;;  %v235_v15 = vld [vmem:[#allocation5 + $0x40] sm:$0xff]  ;;  %s595_s13 = scalar_lea.vmem %s413_s12, 32  ;;  %p600_p11 = scmp.lt.s32.totalorder %s413_s12, %s413_s12 }
  0x3a   :  { %498 = vmatpush3.bf16.msra.mxu0 %v497_v5  ;;  %v506_v14 = vpack.c.bf16 %v151_v13, %v150_v12  ;;  %v236_v16 = vld [vmem:[#allocation5 + $0x48] sm:$0xff]  ;;  %v422_v18 = vld [vmem:[%s738_s2] ss:$0 sm:$0xff]  ;;  %v238_v24 = vld [vmem:[#allocation5 + $0x58] sm:$0xff]  ;;  %p596_p10 = scmp.ne.s32.totalorder %s413_s12, %s595_s13  ;;  %p601_p12 = scmp.lt.s32.totalorder %s595_s13, %s595_s13 }
  0x3b   :  { %499 = vmatprep.subr.bf16.mxu0 %v628_v0  ;;  %504 = vmatpush3.bf16.msra.mxu1 %v503_v10  ;;  %v509_v17 = vpack.c.bf16 %v236_v16, %v235_v15  ;;  %v237_v23 = vld [vmem:[#allocation5 + $0x50] sm:$0xff]  ;;  %v321_v26 = vld [vmem:[#allocation7] sm:$0xff]  ;;  %v322_v27 = vld [vmem:[#allocation7 + $0x8] sm:$0xff] }
  0x3c   :  { %505 = vmatprep.subr.bf16.mxu1 %v628_v0  ;;  %v512_v25 = vpack.c.bf16 %v238_v24, %v237_v23  ;;  %v515_v28 = vpack.c.bf16 %v322_v27, %v321_v26  ;;  %v425_v29 = vld [vmem:[%s738_s2 + $0x1] ss:$0 sm:$0xff]  ;;  %v324_v35 = vld [vmem:[#allocation7 + $0x18] sm:$0xff]  ;;  %v430_v42 = vld [vmem:[%s740_s4] ss:$0 sm:$0xff]  ;;  %p602_p13 = por %p601_p12, %p600_p11 }
  0x3d   :  { %v323_v34 = vld [vmem:[#allocation7 + $0x10] sm:$0xff]  ;;  %v428_v37 = vld [vmem:[%s738_s2 + $0x2] ss:$0 sm:$0xff] }
  0x3e   :  { %501 = vmatpush3.bf16.msra.mxu0 %v500_v9  ;;  %v518_v36 = vpack.c.bf16 %v324_v35, %v323_v34  ;;  %p603_p0 = pnand %p602_p13, %p596_p10 }
  0x3f   :  { %508 = vmatprep.subr.bf16.mxu0 %v628_v0  ;;  %507 = vmatpush3.bf16.msra.mxu1 %v506_v14 }
  0x40   :  { %514 = vmatprep.subr.bf16.mxu1 %v628_v0 }
  0x41   :  { %461 = vmatmul.mubr.msk.f32.vlgmr.msra.gmra.mrb[0].mxu0 %vm72_vm1, %v60_v11 }
  0x42   :  { %482 = vmatprep.mubr.msk.f32.mxu0 %vm629_vm0, %v630_v1  ;;  %510 = vmatpush3.bf16.msra.mxu0 %v509_v17 }
  0x43   :  { %511 = vmatprep.subr.bf16.mxu0 %v628_v0 }
  0x46   :  { %513 = vmatpush3.bf16.msra.mxu0 %v512_v25 }
 0x114   :  { %v142_v19 = vpop.f32.mrb[0].mxu0 }
 0x115   :  { %v143_v20 = vadd.f32 %v422_v18, %v142_v19  ;;  %v462_v21 = vpop.f32.mrb[1].mxu0 }
 0x117   :  { %v146_v22 = vmax.f32 %v143_v20, 0.0 }
 0x119   :  { %472 = vmatmul.mubr.msk.f32.vlgmr.msra.gmra.mrb[0].mxu1 %vm72_vm1, %v146_v22 }
 0x11a   :  { %493 = vmatprep.mubr.msk.f32.mxu1 %vm629_vm0, %v630_v1  ;;  %516 = vmatpush3.bf16.msra.mxu1 %v515_v28 }
 0x11b   :  { %517 = vmatprep.subr.bf16.mxu1 %v628_v0 }
 0x11e   :  { %519 = vmatpush3.bf16.msra.mxu1 %v518_v36 }
 0x1ec   :  { %v229_v30 = vpop.f32.mrb[0].mxu1 }
 0x1ed   :  { %v230_v31 = vadd.f32 %v425_v29, %v229_v30  ;;  %v473_v32 = vpop.f32.mrb[1].mxu1 }
 0x1ef   :  { %v233_v33 = vmax.f32 %v230_v31, 0.0 }
 0x1f1   :  { %483 = vmatmul.mubr.msk.f32.vlgmr.msra.gmra.mrb[2].mxu0 %vm72_vm1, %v233_v33 }
 0x2c4   :  { %v316_v38 = vpop.f32.mrb[2].mxu0 }
 0x2c5   :  { %v317_v39 = vadd.f32 %v428_v37, %v316_v38  ;;  %v484_v40 = vpop.f32.mrb[3].mxu0 }
 0x2c7   :  { %v320_v41 = vmax.f32 %v317_v39, 0.0 }
 0x2c9   :  { %494 = vmatmul.mubr.msk.f32.vlgmr.msra.gmra.mrb[2].mxu1 %vm72_vm1, %v320_v41 }
 0x39c   :  { %v401_v43 = vpop.f32.mrb[2].mxu1 }
 0x39d   :  { %v402_v44 = vadd.f32 %v430_v42, %v401_v43  ;;  %v495_v45 = vpop.f32.mrb[3].mxu1 }
 0x39f   :  { %405 = vst [vmem:[#allocation8] sm:$0x3] %v402_v44 }
 0x3a0   :  { %606 = shalt.err (!%p603_p0)
}
 0x3a1   :  { %s607_s15 = scalar_lea.hbm %s741_s5, 32 }
 0x3a2   :  { %p608_p1 = scmp.ne.s32.totalorder %s741_s5, %s607_s15  ;;  %p611_p2 = scmp.lt.u32.totalorder %s607_s15, %s741_s5 }
 0x3a4   :  { %p613_p3 = pnand %p611_p2, %p608_p1 }
 0x3a6   :  { %616 = shalt.err (!%p613_p3)
}
 0x3a7   :  { %415 = dma.vmem_to_hbm [thread:$0]  %s413_s12, 32, %s741_s5, [#allocation4]  }
 0x3a8   :  { %621 = dma.done.wait [#allocation4], 32  }
 0x3a9   :  { %622 = vsyncadd [#allocation4], 4294967264 }
 0x3aa   :  { %419 = vsyncpa [#allocation3], 1 }
 0x3ab   :  { %420 = vsyncpa [#allocation6], 1 }
 0x3ac   :  { %421 = vsyncpa [#allocation4], 1 }

</bundles_post_ra>
